<compile_context>
chip_gen: v5e
topology: v5e:2x2
jax: 0.10.0
libtpu: 0.0.40
codegen_flags: <defaults>
</compile_context>

<pallas_src>
import functools

import jax
import jax.numpy as jnp
from jax.experimental import pallas as pl
from jax.experimental.pallas import tpu as pltpu


def _contrastive_loss_kernel(a_ref, p_ref, n_ref, o_ref, *, margin, batch):
    a = a_ref[...].astype(jnp.float32)
    p = p_ref[...].astype(jnp.float32)
    n = n_ref[...].astype(jnp.float32)

    tb = a.shape[0]  # static tile-row count

    # Fused row reduction: (a-p)^2 - (a-n)^2 == (n-p) * (2a - p - n)
    d = (n - p) * (2.0 * a - p - n)
    s = jnp.sum(d, axis=1, keepdims=True)          # (TB, 1) lane reduce
    vals = jnp.maximum(s + margin, 0.0)            # (TB, 1)

    # Mask rows of a ragged last tile (padded rows must contribute 0).
    row = jax.lax.broadcasted_iota(jnp.int32, (tb, 1), 0) + pl.program_id(0) * tb
    vals = jnp.where(row < batch, vals, 0.0)

    partial = jnp.sum(vals, axis=0, keepdims=True)  # (1, 1) sublane reduce

    # Lane-dense (8, 128) output block; wrapper reads element [0, 0] per tile.
    o_ref[...] = jnp.broadcast_to(partial, o_ref.shape)


def _pick_tile_rows(B, D, itemsize):
    """Pick tile rows so each input tile is ~2 MiB and the double-buffered
    footprint (3 inputs x 2 buffers x TB x D x itemsize) stays ~<= 12 MiB."""
    target_tile_bytes = 2 * 1024 * 1024
    row_bytes = max(1, D * itemsize)
    tb = max(8, target_tile_bytes // row_bytes)
    tb = int(tb) // 8 * 8
    tb = max(tb, 8)
    if tb >= B:
        return B  # single tile covers the whole batch (full-dim block is always legal)
    return tb


def contrastive_loss(anchor, pos, neg, margin=1.0):
    """Pallas implementation of ContrastiveLoss.forward.

    anchor, pos, neg: [B, D] arrays (same shape; f32 or bf16).
    Returns a scalar float32 loss.

    Note: for genuinely tiny inputs, letting XLA fuse the plain jnp expression
    is faster than any pallas_call; this kernel targets HBM-bound sizes.
    """
    assert anchor.shape == pos.shape == neg.shape
    B, D = anchor.shape
    itemsize = jnp.dtype(anchor.dtype).itemsize

    TB = _pick_tile_rows(B, D, itemsize)
    num_tiles = pl.cdiv(B, TB)

    kernel = functools.partial(
        _contrastive_loss_kernel, margin=float(margin), batch=B
    )

    cost = pl.CostEstimate(
        flops=6 * B * D,
        transcendentals=0,
        bytes_accessed=3 * B * D * itemsize + num_tiles * 8 * 128 * 4,
    )

    out = pl.pallas_call(
        kernel,
        out_shape=jax.ShapeDtypeStruct((num_tiles * 8, 128), jnp.float32),
        grid=(num_tiles,),
        in_specs=[
            pl.BlockSpec((TB, D), lambda i: (i, 0)),
            pl.BlockSpec((TB, D), lambda i: (i, 0)),
            pl.BlockSpec((TB, D), lambda i: (i, 0)),
        ],
        out_specs=pl.BlockSpec((8, 128), lambda i: (i, 0)),
        compiler_params=pltpu.CompilerParams(
            dimension_semantics=("parallel",),
            vmem_limit_bytes=32 * 1024 * 1024,
        ),
        cost_estimate=cost,
    )(anchor, pos, neg)

    partials = out[::8, 0]            # one partial sum per batch tile
    return jnp.sum(partials) / B      # global mean over the true batch size


if __name__ == "__main__":
    key = jax.random.PRNGKey(0)
    k1, k2, k3 = jax.random.split(key, 3)

    B, D = 8, 32  # small batch of 8 embeddings, hidden size 32
    anchor = jax.random.normal(k1, (B, D), dtype=jnp.float32)
    pos = jax.random.normal(k2, (B, D), dtype=jnp.float32)
    neg = jax.random.normal(k3, (B, D), dtype=jnp.float32)

    loss = contrastive_loss(anchor, pos, neg, margin=1.0)
    loss = jax.block_until_ready(loss)

    # Pure-JAX reference (original formulation) for sanity check.
    part1 = jnp.sum((anchor - pos) ** 2, axis=1)
    part2 = jnp.sum((anchor - neg) ** 2, axis=1)
    ref = jnp.mean(jnp.maximum(part1 - part2 + 1.0, 0.0))
    assert jnp.allclose(loss, ref, rtol=1e-4, atol=1e-4), (loss, ref)

    print("KERNEL_OK")
</pallas_src>

<mosaic_0001>
module attributes {stable_mosaic.version = 11 : i64} {
  func.func @_contrastive_loss_kernel(%arg0: i32, %arg1: memref<8x32xf32, #tpu.memory_space<vmem>>, %arg2: memref<8x32xf32, #tpu.memory_space<vmem>>, %arg3: memref<8x32xf32, #tpu.memory_space<vmem>>, %arg4: memref<8x128xf32, #tpu.memory_space<vmem>>) attributes {dimension_semantics = [#tpu.dimension_semantics<parallel>], iteration_bounds = array<i64: 1>, scalar_prefetch = 0 : i64, scratch_operands = 0 : i64, tpu.core_type = #tpu.core_type<tc>, window_params = [{transform_indices = @transform_0, window_bounds = array<i64: 8, 32>}, {transform_indices = @transform_1, window_bounds = array<i64: 8, 32>}, {transform_indices = @transform_2, window_bounds = array<i64: 8, 32>}, {transform_indices = @transform_3, window_bounds = array<i64: 8, 128>}]} {
    %c0 = arith.constant 0 : index
    %c0_0 = arith.constant 0 : index
    %0 = vector.load %arg1[%c0, %c0_0] : memref<8x32xf32, #tpu.memory_space<vmem>>, vector<8x32xf32>
    %c0_1 = arith.constant 0 : index
    %c0_2 = arith.constant 0 : index
    %1 = vector.load %arg2[%c0_1, %c0_2] : memref<8x32xf32, #tpu.memory_space<vmem>>, vector<8x32xf32>
    %c0_3 = arith.constant 0 : index
    %c0_4 = arith.constant 0 : index
    %2 = vector.load %arg3[%c0_3, %c0_4] : memref<8x32xf32, #tpu.memory_space<vmem>>, vector<8x32xf32>
    %3 = arith.subf %2, %1 : vector<8x32xf32>
    %cst = arith.constant 2.000000e+00 : f32
    %4 = vector.broadcast %cst : f32 to vector<8x32xf32>
    %5 = arith.mulf %4, %0 : vector<8x32xf32>
    %6 = arith.subf %5, %1 : vector<8x32xf32>
    %7 = arith.subf %6, %2 : vector<8x32xf32>
    %8 = arith.mulf %3, %7 : vector<8x32xf32>
    %cst_5 = arith.constant dense<0.000000e+00> : vector<8xf32>
    %9 = vector.multi_reduction <add>, %8, %cst_5 [1] : vector<8x32xf32> to vector<8xf32>
    %10 = vector.shape_cast %9 : vector<8xf32> to vector<8x1xf32>
    %cst_6 = arith.constant 1.000000e+00 : f32
    %11 = vector.broadcast %cst_6 : f32 to vector<8x1xf32>
    %12 = arith.addf %10, %11 : vector<8x1xf32>
    %cst_7 = arith.constant 0.000000e+00 : f32
    %13 = vector.broadcast %cst_7 : f32 to vector<8x1xf32>
    %14 = arith.maximumf %12, %13 : vector<8x1xf32>
    %15 = tpu.iota {dimensions = array<i32: 0>} : vector<8x1xi32>
    %c8_i32 = arith.constant 8 : i32
    %16 = arith.muli %arg0, %c8_i32 : i32
    %17 = vector.broadcast %16 : i32 to vector<8x1xi32>
    %18 = arith.addi %15, %17 : vector<8x1xi32>
    %c8_i32_8 = arith.constant 8 : i32
    %19 = vector.broadcast %c8_i32_8 : i32 to vector<8x1xi32>
    %20 = arith.cmpi slt, %18, %19 : vector<8x1xi32>
    %cst_9 = arith.constant 0.000000e+00 : f32
    %21 = vector.broadcast %cst_9 : f32 to vector<8x1xf32>
    %22 = arith.select %20, %14, %21 : vector<8x1xi1>, vector<8x1xf32>
    %cst_10 = arith.constant dense<0.000000e+00> : vector<1xf32>
    %23 = vector.multi_reduction <add>, %22, %cst_10 [0] : vector<8x1xf32> to vector<1xf32>
    %24 = vector.shape_cast %23 : vector<1xf32> to vector<1x1xf32>
    %25 = vector.shape_cast %24 : vector<1x1xf32> to vector<1x1xf32>
    %26 = vector.broadcast %25 : vector<1x1xf32> to vector<8x128xf32>
    %c0_11 = arith.constant 0 : index
    %c0_12 = arith.constant 0 : index
    %27 = vector.load %arg4[%c0_11, %c0_12] : memref<8x128xf32, #tpu.memory_space<vmem>>, vector<8x128xf32>
    tpu.vector_store %arg4[%c0_11, %c0_12], %26 {strides = array<i32>} : memref<8x128xf32, #tpu.memory_space<vmem>>, vector<8x128xf32>,
    return
  }
  func.func @transform_0(%arg0: i32) -> (i32, i32) {
    %c0_i32 = arith.constant 0 : i32
    %c0_i32_0 = arith.constant 0 : i32
    return %arg0, %c0_i32 : i32, i32
  }
  func.func @transform_1(%arg0: i32) -> (i32, i32) {
    %c0_i32 = arith.constant 0 : i32
    %c0_i32_0 = arith.constant 0 : i32
    return %arg0, %c0_i32 : i32, i32
  }
  func.func @transform_2(%arg0: i32) -> (i32, i32) {
    %c0_i32 = arith.constant 0 : i32
    %c0_i32_0 = arith.constant 0 : i32
    return %arg0, %c0_i32 : i32, i32
  }
  func.func @transform_3(%arg0: i32) -> (i32, i32) {
    %c0_i32 = arith.constant 0 : i32
    %c0_i32_0 = arith.constant 0 : i32
    return %arg0, %c0_i32 : i32, i32
  }
}

</mosaic_0001>

<bundles_post_ra>
// kernel: tpu_custom_call.1
= control target key start
LH: loop header
LB: loop body
LE: loop exit
PB: predicated region body
PF: predicated region fallthrough
CT: control target
= control target key end

     0   :  { %8 = vsyncpa [#allocation3], 0  ;;  %s244_s0 = inlined_call_operand.hbm [shape: f32[8,32], index: 0, kind: input, shape index: {}]   ;;  %s245_s1 = inlined_call_operand.hbm [shape: f32[8,32], index: 1, kind: input, shape index: {}]   ;;  %s246_s2 = inlined_call_operand.hbm [shape: f32[8,32], index: 2, kind: input, shape index: {}]   ;;  %s247_s3 = inlined_call_operand.hbm [shape: f32[8,128], index: 3, kind: output, shape index: {}]  }
   0x1   :  { %9 = vsyncpa [#allocation6], 0  ;;  %s27_s14 = sshll.u32 %s245_s1, 4  ;;  %s28_s14 = int_to_ptr.hbm [resolvable:$true] %s27_s14 }
   0x2   :  { %10 = vsyncpa [#allocation4], 0  ;;  %s208_s15 = smov [#allocation5]   ;;  %s16_s19 = sshll.u32 %s244_s0, 4  ;;  %s17_s19 = int_to_ptr.hbm [resolvable:$true] %s16_s19 }
   0x3   :  { %s29_s16 = sshll.u32 %s208_s15, 4  ;;  %s209_s20 = smov [#allocation2]   ;;  %s30_s16 = int_to_ptr.vmem [resolvable:$true] %s29_s16 }
   0x4   :  { %32 = dma.hbm_to_vmem [thread:$0]  %s28_s14, 128, %s30_s16, [#allocation6]  }
   0x5   :  { %s18_s21 = sshll.u32 %s209_s20, 4  ;;  %s38_s24 = sshll.u32 %s246_s2, 4  ;;  %s19_s21 = int_to_ptr.vmem [resolvable:$true] %s18_s21  ;;  %s39_s24 = int_to_ptr.hbm [resolvable:$true] %s38_s24 }
   0x6   :  { %21 = dma.hbm_to_vmem [thread:$0]  %s17_s19, 128, %s19_s21, [#allocation3]  }
   0x7   :  { %s210_s1 = smov [#allocation7]  }
   0x8   :  { %s40_s25 = sshll.u32 %s210_s1, 4  ;;  %s41_s25 = int_to_ptr.vmem [resolvable:$true] %s40_s25 }
   0x9   :  { %43 = dma.hbm_to_vmem [thread:$0]  %s39_s24, 128, %s41_s25, [#allocation6]  }
   0xa   :  { %202 = dma.done.wait [#allocation3], 128  }
   0xb   :  { %203 = vsyncadd [#allocation3], 4294967168 }
   0xc   :  { %204 = dma.done.wait [#allocation6], 256  }
   0xd   :  { %205 = vsyncadd [#allocation6], 4294967040  ;;  %v56_v0 = vld [vmem:[#allocation2] sm:$0xff]  ;;  %v57_v1 = vld [vmem:[#allocation5] sm:$0xff]  ;;  %vm64_vm0 = vcmask 261120   ;;  %s211_s0 = smov [#allocation8]  }
   0xe   :  { %v58_v2 = vld [vmem:[#allocation7] sm:$0xff]  ;;  %v60_v3 = vmul.f32 2.0, %v56_v0  ;;  %s89_s2 = sshll.u32 %s211_s0, 4  ;;  %s91_s28 = sshll.u32 %s247_s3, 4  ;;  %s90_s2 = int_to_ptr.vmem [resolvable:$true] %s89_s2  ;;  %s92_s28 = int_to_ptr.hbm [resolvable:$true] %s91_s28 }
   0xf   :  { %v59_v4 = vsub.f32 %v58_v2, %v57_v1 }
  0x10   :  { %v61_v5 = vsub.f32 %v60_v3, %v57_v1 }
  0x12   :  { %v62_v6 = vsub.f32 %v61_v5, %v58_v2 }
  0x14   :  { %v63_v7 = vmul.f32 %v62_v6, %v59_v4 }
  0x16   :  { %v65_v8 = vsel %vm64_vm0, %v63_v7, 0.0 }
  0x17   :  { %66 = vadd.xlane.f32.xlu0 %v65_v8 }
  0x8a   :  { %v67_v9 = vpop.xlane.xlu0 %66 }
  0x8b   :  { %v68_v10 = vadd.f32 1.0, %v67_v9 }
  0x8d   :  { %v69_v11 = vmax.f32 %v68_v10, 0.0 }
  0x8f   :  { %v77_v12 = vrot.slane %v69_v11, 4 }
  0x91   :  { %v78_v13 = vadd.f32 %v77_v12, %v69_v11 }
  0x93   :  { %v79_v14 = vrot.slane %v78_v13, 2 }
  0x95   :  { %v80_v15 = vadd.f32 %v79_v14, %v78_v13 }
  0x97   :  { %v81_v16 = vrot.slane %v80_v15, 1 }
  0x99   :  { %v82_v17 = vadd.f32 %v81_v16, %v80_v15 }
  0x9b   :  { %83 = vst [vmem:[#allocation8] sm:$0xff] %v82_v17 }
  0x9c   :  { %94 = dma.vmem_to_hbm [thread:$0]  %s90_s2, 128, %s92_s28, [#allocation4]  }
  0x9d   :  { %206 = dma.done.wait [#allocation4], 128  }
  0x9e   :  { %207 = vsyncadd [#allocation4], 4294967168 }
  0x9f   :  { %99 = vsyncpa [#allocation3], 1 }
  0xa0   :  { %100 = vsyncpa [#allocation6], 1 }
  0xa1   :  { %101 = vsyncpa [#allocation4], 1 }

</bundles_post_ra>
